<compile_context>
chip_gen: v7x
topology: tpu7x:2x2x1
jax: 0.10.0
libtpu: 0.0.40
codegen_flags: <defaults>
</compile_context>

<pallas_src>
import functools

import jax
import jax.numpy as jnp
from jax import lax
from jax.experimental import pallas as pl
from jax.experimental.pallas import tpu as pltpu


_VMEM_TILE_BUDGET = 32 * 1024 * 1024   # pipelined-footprint target used for tile sizing
_VMEM_LIMIT_BYTES = 48 * 1024 * 1024   # explicit scoped-VMEM limit (ok on v5e/v6e 128 MiB, v7x 64 MiB)
_MAX_TILE_BYTES = 8 * 1024 * 1024      # per-buffer DMA tile target (~4-8 MiB per review)
_MIN_GRID_STEPS = 8                    # keep >= 4 grid steps per TensorCore on v7x


def _round_up(x, m):
    return -(-x // m) * m


def _row_log_softmax(x_f32, vocab_size):
    """Numerically stable log-softmax over the last axis of a 2-D f32 tile."""
    if vocab_size % 128 != 0:
        # Defensive lane mask for a non-lane-aligned vocab.  (If the real vocab
        # is not a multiple of 128, padding it once in the wrapper makes the
        # dominant store a full-width vst; this in-kernel fallback is VALU-only
        # and rides free under the HBM roofline.)
        lane = lax.broadcasted_iota(jnp.int32, x_f32.shape, 1)
        x_f32 = jnp.where(lane < vocab_size, x_f32, -jnp.inf)
    m = jnp.max(x_f32, axis=-1, keepdims=True)
    shifted = x_f32 - m
    lse = jnp.log(jnp.sum(jnp.exp(shifted), axis=-1, keepdims=True))
    return shifted - lse


def _logsoftmax_nll_kernel(x_ref, tgt_ref, o_ref, nll_ref, *,
                           vocab_size, seq_len, total_rows, rows_per_tile):
    # x_ref / o_ref: (rows_per_tile, V) tiles of the flattened (N*T, V) logits.
    # tgt_ref:       (rows_per_tile, 1) int32 = target[row // T] for every row.
    # nll_ref:       (rows_per_tile, 1) f32 per-row NLL contribution (0 off t=0).
    x = x_ref[...].astype(jnp.float32)
    word_log = _row_log_softmax(x, vocab_size)
    o_ref[...] = word_log.astype(o_ref.dtype)

    # Fused NLL pick: only rows with global_row % T == 0 (the t=0 slice) that
    # lie inside the logical array contribute.
    base = pl.program_id(0) * rows_per_tile
    row_ids = base + lax.broadcasted_iota(jnp.int32, (rows_per_tile, 1), 0)
    live = ((row_ids % seq_len) == 0) & (row_ids < total_rows)

    # One-hot compare (no dynamic gather on TPU); targets assumed in [0, V).
    vocab_ids = lax.broadcasted_iota(jnp.int32, x.shape, 1)
    onehot = vocab_ids == tgt_ref[...]
    picked = jnp.sum(jnp.where(onehot, word_log, 0.0), axis=-1, keepdims=True)
    nll_ref[...] = jnp.where(live, -picked, 0.0)


def _pick_rows_per_tile(total_rows, vocab, in_itemsize, out_itemsize):
    """Row tile (multiple of 8) sized against a VMEM budget that includes the
    f32 in-kernel temporaries, with a per-buffer DMA cap and a grid-step floor."""
    # 2x double-buffered input + 2x output tiles + ~2x f32 temporaries that
    # spill from the 64x4KiB vreg file, plus the tiny target/NLL side buffers.
    bytes_per_row = vocab * (2 * in_itemsize + 2 * out_itemsize + 2 * 4) + 4 * 4
    rows_budget = _VMEM_TILE_BUDGET // max(1, bytes_per_row)
    rows_dma = _MAX_TILE_BYTES // max(1, vocab * max(in_itemsize, out_itemsize))
    rows = max(8, (min(rows_budget, rows_dma) // 8) * 8)
    # Keep >= _MIN_GRID_STEPS steps so v7x can shard across both TCs and the
    # pipeline has enough iterations to hide the DMA.
    rows_cap = max(8, _round_up(pl.cdiv(total_rows, _MIN_GRID_STEPS), 8))
    return min(rows, rows_cap, _round_up(total_rows, 8))


def evaluate_loss(out_word, target, *, rows_per_tile=None, word_log_dtype=None,
                  donate_logits=False):
    """out_word: (N, T, V) logits; target: (N,) int.

    Returns (word_log (N, T, V), scalar loss), matching
        word_log = log_softmax(out_word, axis=2)
        loss     = sum(NLLLoss(reduction='none')(word_log[:, 0, :], target))

    TODO(synk): only word_log[:, 0, :] feeds the loss in the original module;
    if no caller consumes the full word_log, the full (N, T, V) pass could be
    dropped for a factor-T reduction in HBM traffic and exp work.
    """
    N, T, V = out_word.shape
    if word_log_dtype is None:
        word_log_dtype = out_word.dtype   # pass bf16 logits to halve HBM traffic
    in_itemsize = jnp.dtype(out_word.dtype).itemsize
    out_itemsize = jnp.dtype(word_log_dtype).itemsize

    total_rows = N * T
    logits2d = out_word.reshape(total_rows, V)          # free wrapper reshape
    # target[row // T] broadcast per row (tiny int32 side input, ~4 B/row).
    target_rows = jnp.broadcast_to(
        target.astype(jnp.int32)[:, None], (N, T)).reshape(total_rows, 1)

    if rows_per_tile is None:
        rows_per_tile = _pick_rows_per_tile(total_rows, V, in_itemsize, out_itemsize)
    rows_per_tile = max(8, _round_up(int(rows_per_tile), 8))
    rows_per_tile = min(rows_per_tile, _round_up(total_rows, 8))

    aliases = {}
    if donate_logits and jnp.dtype(out_word.dtype) == jnp.dtype(word_log_dtype):
        aliases = {0: 0}   # reuse the logits buffer for word_log (halves HBM footprint)

    word_log2d, nll_rows = pl.pallas_call(
        functools.partial(_logsoftmax_nll_kernel, vocab_size=V, seq_len=T,
                          total_rows=total_rows, rows_per_tile=rows_per_tile),
        out_shape=(
            jax.ShapeDtypeStruct((total_rows, V), word_log_dtype),
            jax.ShapeDtypeStruct((total_rows, 1), jnp.float32),
        ),
        grid=(pl.cdiv(total_rows, rows_per_tile),),
        in_specs=[
            pl.BlockSpec((rows_per_tile, V), lambda i: (i, 0)),
            pl.BlockSpec((rows_per_tile, 1), lambda i: (i, 0)),
        ],
        out_specs=(
            # pipeline_mode=pl.Buffered(3) is worth a sweep here if profiles
            # still show exposed DMA after tile enlargement; default depth 2
            # keeps the VMEM footprint inside the budget above.
            pl.BlockSpec((rows_per_tile, V), lambda i: (i, 0)),
            pl.BlockSpec((rows_per_tile, 1), lambda i: (i, 0)),
        ),
        compiler_params=pltpu.CompilerParams(
            dimension_semantics=("parallel",),      # megacore-shardable on v7x
            vmem_limit_bytes=_VMEM_LIMIT_BYTES,     # raise the scoped limit explicitly
        ),
        input_output_aliases=aliases,
    )(logits2d, target_rows)

    word_log = word_log2d.reshape(N, T, V)
    # Non-t0 rows contribute exactly 0, so this equals
    # sum_n NLL(word_log[n, 0, :], target[n])  (NLLLoss 'none' then sum over dim 0).
    loss = jnp.sum(nll_rows)
    return word_log, loss


def _reference(out_word, target):
    word_log = jax.nn.log_softmax(out_word.astype(jnp.float32), axis=2)
    word_seq = word_log[:, 0, :]
    nll = -jnp.take_along_axis(word_seq, target[:, None], axis=1)[:, 0]
    return word_log, jnp.sum(nll, axis=0)


if __name__ == "__main__":
    # Small shapes consistent with the module: N caption rows, T rnn steps, V vocab.
    N, T, V = 16, 8, 256
    key = jax.random.PRNGKey(0)
    k1, k2 = jax.random.split(key)

    out_word = jax.random.normal(k1, (N, T, V), dtype=jnp.float32)  # model-output stand-in
    target = jax.random.randint(k2, (N,), 0, V, dtype=jnp.int32)    # captions[0] stand-in

    # Default (auto) tile sizing: grid of _MIN_GRID_STEPS steps here.
    word_log, loss = evaluate_loss(out_word, target)
    # Explicit tile that forces a partial last block (exercises the OOB/row masks).
    word_log2, loss2 = evaluate_loss(out_word, target, rows_per_tile=24)
    jax.block_until_ready((loss, loss2))

    ref_log, ref_loss = _reference(out_word, target)
    assert jnp.allclose(word_log, ref_log, atol=1e-5, rtol=1e-5)
    assert jnp.allclose(word_log2, ref_log, atol=1e-5, rtol=1e-5)
    assert jnp.allclose(loss, ref_loss, atol=1e-3, rtol=1e-5)
    assert jnp.allclose(loss2, ref_loss, atol=1e-3, rtol=1e-5)

    print("KERNEL_OK")
</pallas_src>

<mosaic_0001>
module attributes {stable_mosaic.version = 11 : i64} {
  func.func @_logsoftmax_nll_kernel(%arg0: i32, %arg1: memref<16x256xf32, #tpu.memory_space<vmem>>, %arg2: memref<16x1xi32, #tpu.memory_space<vmem>>, %arg3: memref<16x256xf32, #tpu.memory_space<vmem>>, %arg4: memref<16x1xf32, #tpu.memory_space<vmem>>) attributes {dimension_semantics = [#tpu.dimension_semantics<parallel>], iteration_bounds = array<i64: 8>, scalar_prefetch = 0 : i64, scratch_operands = 0 : i64, tpu.core_type = #tpu.core_type<tc>, window_params = [{transform_indices = @transform_0, window_bounds = array<i64: 16, 256>}, {transform_indices = @transform_1, window_bounds = array<i64: 16, 1>}, {transform_indices = @transform_2, window_bounds = array<i64: 16, 256>}, {transform_indices = @transform_3, window_bounds = array<i64: 16, 1>}]} {
    %c0 = arith.constant 0 : index
    %c0_0 = arith.constant 0 : index
    %0 = vector.load %arg1[%c0, %c0_0] : memref<16x256xf32, #tpu.memory_space<vmem>>, vector<16x256xf32>
    %cst = arith.constant dense<0xFF800000> : vector<16xf32>
    %1 = vector.multi_reduction <maximumf>, %0, %cst [1] : vector<16x256xf32> to vector<16xf32>
    %2 = vector.shape_cast %1 : vector<16xf32> to vector<16x1xf32>
    %3 = vector.broadcast %2 : vector<16x1xf32> to vector<16x256xf32>
    %4 = arith.subf %0, %3 : vector<16x256xf32>
    %5 = math.exp %4 : vector<16x256xf32>
    %cst_1 = arith.constant dense<0.000000e+00> : vector<16xf32>
    %6 = vector.multi_reduction <add>, %5, %cst_1 [1] : vector<16x256xf32> to vector<16xf32>
    %7 = vector.shape_cast %6 : vector<16xf32> to vector<16x1xf32>
    %8 = math.log %7 : vector<16x1xf32>
    %9 = vector.broadcast %8 : vector<16x1xf32> to vector<16x256xf32>
    %10 = arith.subf %4, %9 : vector<16x256xf32>
    %c0_2 = arith.constant 0 : index
    %c0_3 = arith.constant 0 : index
    %11 = vector.load %arg3[%c0_2, %c0_3] : memref<16x256xf32, #tpu.memory_space<vmem>>, vector<16x256xf32>
    tpu.vector_store %arg3[%c0_2, %c0_3], %10 {strides = array<i32>} : memref<16x256xf32, #tpu.memory_space<vmem>>, vector<16x256xf32>,
    %c16_i32 = arith.constant 16 : i32
    %12 = arith.muli %arg0, %c16_i32 : i32
    %13 = tpu.iota {dimensions = array<i32: 0>} : vector<16x1xi32>
    %14 = vector.broadcast %12 : i32 to vector<16x1xi32>
    %15 = arith.addi %14, %13 : vector<16x1xi32>
    %c8_i32 = arith.constant 8 : i32
    %c0_i32 = arith.constant 0 : i32
    %16 = arith.cmpi eq, %c8_i32, %c0_i32 : i32
    %c1_i32 = arith.constant 1 : i32
    %17 = arith.select %16, %c1_i32, %c8_i32 : i32
    %18 = vector.broadcast %17 : i32 to vector<16x1xi32>
    %19 = arith.remsi %15, %18 : vector<16x1xi32>
    %c0_i32_4 = arith.constant 0 : i32
    %20 = vector.broadcast %c0_i32_4 : i32 to vector<16x1xi32>
    %21 = arith.cmpi ne, %19, %20 : vector<16x1xi32>
    %c0_i32_5 = arith.constant 0 : i32
    %22 = vector.broadcast %c0_i32_5 : i32 to vector<16x1xi32>
    %23 = arith.cmpi slt, %19, %22 : vector<16x1xi32>
    %c0_i32_6 = arith.constant 0 : i32
    %24 = arith.cmpi slt, %17, %c0_i32_6 : i32
    %25 = vector.broadcast %24 : i1 to vector<16x1xi1>
    %26 = vector.broadcast %25 : vector<16x1xi1> to vector<16x1xi1>
    %27 = arith.xori %23, %26 : vector<16x1xi1>
    %28 = arith.andi %27, %21 : vector<16x1xi1>
    %29 = vector.broadcast %17 : i32 to vector<16x1xi32>
    %30 = arith.addi %19, %29 : vector<16x1xi32>
    %31 = arith.select %28, %30, %19 : vector<16x1xi1>, vector<16x1xi32>
    %c0_i32_7 = arith.constant 0 : i32
    %32 = vector.broadcast %c0_i32_7 : i32 to vector<16x1xi32>
    %33 = arith.cmpi eq, %31, %32 : vector<16x1xi32>
    %c128_i32 = arith.constant 128 : i32
    %34 = vector.broadcast %c128_i32 : i32 to vector<16x1xi32>
    %35 = arith.cmpi slt, %15, %34 : vector<16x1xi32>
    %36 = arith.andi %33, %35 : vector<16x1xi1>
    %37 = tpu.iota {dimensions = array<i32: 1>} : vector<16x256xi32>
    %c0_8 = arith.constant 0 : index
    %c0_9 = arith.constant 0 : index
    %38 = vector.load %arg2[%c0_8, %c0_9] : memref<16x1xi32, #tpu.memory_space<vmem>>, vector<16x1xi32>
    %39 = vector.broadcast %38 : vector<16x1xi32> to vector<16x256xi32>
    %40 = arith.cmpi eq, %37, %39 : vector<16x256xi32>
    %cst_10 = arith.constant 0.000000e+00 : f32
    %41 = vector.broadcast %cst_10 : f32 to vector<16x256xf32>
    %42 = arith.select %40, %10, %41 : vector<16x256xi1>, vector<16x256xf32>
    %cst_11 = arith.constant dense<0.000000e+00> : vector<16xf32>
    %43 = vector.multi_reduction <add>, %42, %cst_11 [1] : vector<16x256xf32> to vector<16xf32>
    %44 = vector.shape_cast %43 : vector<16xf32> to vector<16x1xf32>
    %cst_12 = arith.constant 0.000000e+00 : f32
    %45 = vector.broadcast %cst_12 : f32 to vector<16x1xf32>
    %46 = arith.subf %45, %44 : vector<16x1xf32>
    %cst_13 = arith.constant 0.000000e+00 : f32
    %47 = vector.broadcast %cst_13 : f32 to vector<16x1xf32>
    %48 = arith.select %36, %46, %47 : vector<16x1xi1>, vector<16x1xf32>
    %c0_14 = arith.constant 0 : index
    %c0_15 = arith.constant 0 : index
    %49 = vector.load %arg4[%c0_14, %c0_15] : memref<16x1xf32, #tpu.memory_space<vmem>>, vector<16x1xf32>
    tpu.vector_store %arg4[%c0_14, %c0_15], %48 {strides = array<i32>} : memref<16x1xf32, #tpu.memory_space<vmem>>, vector<16x1xf32>,
    return
  }
  func.func @transform_0(%arg0: i32) -> (i32, i32) {
    %c0_i32 = arith.constant 0 : i32
    %c0_i32_0 = arith.constant 0 : i32
    return %arg0, %c0_i32 : i32, i32
  }
  func.func @transform_1(%arg0: i32) -> (i32, i32) {
    %c0_i32 = arith.constant 0 : i32
    %c0_i32_0 = arith.constant 0 : i32
    return %arg0, %c0_i32 : i32, i32
  }
  func.func @transform_2(%arg0: i32) -> (i32, i32) {
    %c0_i32 = arith.constant 0 : i32
    %c0_i32_0 = arith.constant 0 : i32
    return %arg0, %c0_i32 : i32, i32
  }
  func.func @transform_3(%arg0: i32) -> (i32, i32) {
    %c0_i32 = arith.constant 0 : i32
    %c0_i32_0 = arith.constant 0 : i32
    return %arg0, %c0_i32 : i32, i32
  }
}

</mosaic_0001>

<bundles_post_ra>
// kernel: tpu_custom_call.1
= control target key start
LH: loop header
LB: loop body
LE: loop exit
PB: predicated region body
PF: predicated region fallthrough
CT: control target
= control target key end

     0   :  { %9 = vsyncpa [#allocation3], 0  ;;  %s869_s0 = inlined_call_operand.hbm [shape: f32[128,256], index: 0, kind: input, shape index: {}]   ;;  %s870_s1 = inlined_call_operand.vmem [shape: s32[128,1], index: 1, kind: input, shape index: {}]   ;;  %s871_s2 = inlined_call_operand.hbm [shape: f32[128,256], index: 2, kind: output, shape index: {0}]   ;;  %s872_s3 = inlined_call_operand.vmem [shape: f32[128,1], index: 3, kind: output, shape index: {1}]  }
   0x1   :  { %11 = vsyncpa [#allocation3 + $0x1], 0 }
   0x2   :  { %12 = vsyncpa [#allocation4], 0 }
   0x3   :  { %14 = vsyncpa [#allocation4 + $0x1], 0  ;;  %s688_s12 = smov 0   ;;  %s690_s13 = smov 0  }
   0x4   :  { %s692_s14 = smov 0   ;;  %s694_s15 = smov 0  }
   0x5 LB: > { %s709_s16 = sadd.s32 4294967295, %s659_s15   ;;  %s471_s17 = sadd.s32 4294967294, %s659_s15   ;;  %s659_s15 = sphi %s694_s15, %s884_s15   ;;  %s655_s14 = sphi %s692_s14, %s883_s14   ;;  %s651_s13 = sphi %s690_s13, %s882_s13   ;;  %s647_s12 = sphi %s688_s12, %s881_s12  }
   0x6   : > { %s713_s18 = sadd.s32 1, %s659_s15   ;;  %s27_s19 = sadd.s32 1, %s655_s14 }
   0x7   : > { %s24_s20 = ssub.s32 %s659_s15, %s713_s18  ;;  %p34_p0 = scmp.ne.s32.totalorder %s655_s14, %s651_s13 }
   0x8   : > { %p25_p1 = scmp.eq.s32.totalorder %s24_s20, 0  ;;  %p35_p2 = scmp.eq.s32.totalorder %s659_s15, 0 }
   0x9   : > { %p40_p3 = scmp.ne.s32.totalorder %s651_s13, %s647_s12  ;;  %p41_p4 = scmp.eq.s32.totalorder %s709_s16, 0 }
   0xa   : > { %s725_s21 = scalar_select %p25_p1, %s655_s14, %s27_s19  }
   0xb   : > { %p727_p5 = por %p35_p2, %p34_p0  ;;  %p731_p6 = por %p41_p4, %p40_p3 }
   0xc   : > { %p90_p7 = scmp.eq.s32.totalorder %s709_s16, 7  ;;  %p96_p8 = scmp.eq.s32.totalorder %s471_s17, 7 }
   0xd   : > { %p510_p9 = scmp.lt.s32.totalorder %s659_s15, 8  ;;  %s142_s26 = sand.u32 1, %s655_s14  }
   0xe   : > { %p737_p10 = por %p90_p7, %p34_p0  ;;  %p741_p11 = por %p96_p8, %p40_p3 }
   0xf   : > { %s495_s27 = sshll.u32 %s659_s15, 9  ;;  %s474_s28 = sshll.u32 %s142_s26, 5 }
  0x10   : > { %s876_s24 = scalar_select %p737_p10, 1, 0 }
  0x11   : > { %s877_s25 = scalar_select %p741_p11, 1, 0 }
  0x12   : > { %s750_s4 = scalar_lea.hbm %s869_s0, %s495_s27  ;;  %s146_s5 = scalar_lea.vmem [#allocation2], %s474_s28 }
  0x13   : > { %s154_s6 = sshll.u32 %s146_s5, 4  ;;  %p754_p12 = pnand %p510_p9, %p727_p5  ;;  %s758_s6 = int_to_ptr.vmem [resolvable:$true] %s154_s6 }
  0x14   : > { %s760_s8 = scalar_lea.sflag [#allocation3], %s142_s26  ;;  %s563_s9 = scalar_lea.hbm %s750_s4, 512 }
  0x15   : > { %p564_p13 = scmp.ne.s32.totalorder %s750_s4, %s563_s9  ;;  %p565_p0 = pneg %p754_p12 }
  0x16   : > { %s568_s17 = scalar_lea.hbm %s869_s0, 4096  ;;  %p569_p3 = scmp.lt.u32.totalorder %s750_s4, %s869_s0 }
  0x17   : > { %p566_p1 = pnand %p565_p0, %p564_p13  ;;  %p570_p4 = scmp.lt.u32.totalorder %s568_s17, %s563_s9 }
  0x18   : > { %p572_p7 = scmp.lt.u32.totalorder %s563_s9, %s750_s4 }
  0x19   : > { %p567_p2 = pneg %p566_p1  ;;  %p571_p5 = por %p570_p4, %p569_p3 }
  0x1b   : > { %p573_p8 = por %p572_p7, %p571_p5 }
  0x1d   : > { %p574_p9 = pnand %p573_p8, %p567_p2 }
  0x1f   : > { %577 = shalt.err (!%p574_p9)
}
  0x20   : > { %s578_s22 = scalar_lea.vmem %s758_s6, 512  ;;  %s661_s26 = smov [#allocation2]  }
  0x21   : > { %p579_p13 = scmp.ne.s32.totalorder %s758_s6, %s578_s22  ;;  %s583_s27 = sshll.u32 %s661_s26, 4  ;;  %s584_s27 = int_to_ptr.vmem [resolvable:$false] %s583_s27 }
  0x22   : > { %s585_s28 = scalar_lea.vmem %s584_s27, 1024  ;;  %p586_p10 = scmp.lt.s32.totalorder %s758_s6, %s584_s27 }
  0x23   : > { %p581_p1 = pnand %p579_p13, %p565_p0  ;;  %p587_p3 = scmp.lt.s32.totalorder %s585_s28, %s578_s22 }
  0x25   : > { %p582_p11 = pneg %p581_p1  ;;  %p588_p4 = por %p587_p3, %p586_p10 }
  0x27   : > { %p589_p5 = pnand %p588_p4, %p582_p11 }
  0x29   : > { %592 = shalt.err (!%p589_p5)
}
  0x2a   : > { %s662_s29 = smov 256   ;;  %s663_s30 = smov 16  }
  0x2b   : > { %505 = dma.hbm_to_vmem [thread:$0]  (!%p754_p12), %s750_s4, 512, %s758_s6, %s760_s8, %s662_s29, %s662_s29, %s663_s30  }
  0x2c   : > { %p478_p0 = scmp.ge.s32.totalorder %s659_s15, 1  ;;  %p171_p2 = scmp.lt.s32.totalorder %s659_s15, 9 }
  0x2e   : > { %p172_p7 = pnand %p478_p0, %p171_p2 }
  0x2f   : > { %s791_s5 = sand.u32 (!%p172_p7), 1, %s651_s13  }
  0x30   : > { %175 = sbr.rel (%p172_p7) target bundleno = 529 (0x211), region = 28  ;;  %s479_s9 = sshll.u32 (!%p172_p7), %s791_s5, 5 }
  0x31   : > { %s178_s10 = scalar_lea.sflag (!%p172_p7), [#allocation3], %s791_s5  ;;  %s181_s11 = scalar_lea.vmem (!%p172_p7), [#allocation2], %s479_s9 }
  0x37   : > { %638 = dma.done.wait (%p731_p6), %s178_s10, 512  }
  0x38   : > { %640 = vsyncadd (%p731_p6), %s178_s10, 4294966784  ;;  %v228_v0 = vld [vmem:[%s181_s11] sm:$0xff]  ;;  %v229_v1 = vld [vmem:[%s181_s11 + $0x8] sm:$0xff]  ;;  %s481_s4 = sshll.u32 %s709_s16, 1  ;;  %v664_v6 = vmov 0   ;;  %v269_v26 = vlaneseq  ;;  %s206_s17 = scalar_lea.vmem [#allocation5], %s479_s9 }
  0x39   : > { %v230_v2 = vld [vmem:[%s181_s11 + $0x10] sm:$0xff]  ;;  %v232_v3 = vmax.f32 %v228_v0, %v229_v1  ;;  %v231_v4 = vld [vmem:[%s181_s11 + $0x18] sm:$0xff]  ;;  %549 = vset.pattern.permute.xlu0 %v664_v6  ;;  %p216_p10 = scmp.lt.s32.totalorder %s481_s4, 15  ;;  %550 = vset.pattern.permute.xlu1 %v664_v6  ;;  %s357_s19 = sshll.u32 %s206_s17, 4  ;;  %s813_s19 = int_to_ptr.vmem [resolvable:$true] %s357_s19 }
  0x3a   : > { %v235_v5 = vmax.f32 %v230_v2, %v231_v4  ;;  %v306_v28 = vand.u32 127, %v269_v26  ;;  %s497_s20 = sshll.u32 %s709_s16, 9  ;;  %s338_s28 = scalar_lea.sflag [#allocation4], %s791_s5 }
  0x3b   : > { %233 = vmax.xlane.f32.xlu0 %v232_v3  ;;  %s886_s4 = smov (!%p216_p10, %s481_s4), 15  ;;  %s819_s27 = scalar_lea.hbm %s871_s2, %s497_s20 }
  0x3c   : > { %s482_s23 = sshll.u32 %s886_s4, 3  ;;  %v307_v29 = vadd.s32 128, %v306_v28  ;;  %s593_s29 = scalar_lea.vmem %s813_s19, 512 }
  0x3d   : > { %s219_s8 = scalar_lea.vmem %s870_s1, %s482_s23  ;;  %p594_p6 = scmp.ne.s32.totalorder %s813_s19, %s593_s29 }
  0x3e   : > { %v308_v7 = vld [vmem:[%s219_s8] sm:$0xff]  ;;  %v309_v24 = vld [vmem:[%s219_s8 + $0x8] sm:$0xff]  ;;  %p879_p11 = scmp.ne.s32.totalorder %s876_s24, 0  ;;  %s665_s30 = smov [#allocation5]  }
  0x3f   : > { %236 = vmax.xlane.f32.xlu0 %v235_v5  ;;  %s597_s9 = sshll.u32 %s665_s30, 4  ;;  %s598_s9 = int_to_ptr.vmem [resolvable:$false] %s597_s9 }
  0x40   : > { %p595_p12 = pnand %p594_p6, %p879_p11  ;;  %s599_s10 = scalar_lea.vmem %s598_s9, 1024 }
  0x41   : > { %p600_p9 = scmp.lt.s32.totalorder %s813_s19, %s598_s9  ;;  %p601_p13 = scmp.lt.s32.totalorder %s599_s10, %s593_s29 }
  0x42   : > { %p596_p8 = pneg %p595_p12 }
  0x43   : > { %p602_p1 = por %p601_p13, %p600_p9 }
  0x45   : > { %p603_p3 = pnand %p602_p1, %p596_p8 }
  0x55   : > { %311 = vperm.xlu0 %549, %v308_v7  }
  0xc8   : > { %v234_v8 = vpop.xlane.xlu0 %233 }
  0xc9   : > { %v238_v9 = vsub.f32 %v228_v0, %v234_v8  ;;  %v239_v10 = vsub.f32 %v229_v1, %v234_v8 }
  0xcb   : > { %v242_v11 = vmul.f32 1.442695, %v238_v9  ;;  %v244_v12 = vmul.f32 1.442695, %v239_v10 }
  0xcc   : > { %v237_v13 = vpop.xlane.xlu0 %236 }
  0xcd   : > { %551 = vpow2.f32 %v242_v11  ;;  %v240_v14 = vsub.f32 %v230_v2, %v237_v13  ;;  %v241_v15 = vsub.f32 %v231_v4, %v237_v13 }
  0xce   : > { %553 = vpow2.f32 %v244_v12 }
  0xcf   : > { %v246_v16 = vmul.f32 1.442695, %v240_v14  ;;  %v248_v17 = vmul.f32 1.442695, %v241_v15 }
  0xd1   : > { %555 = vpow2.f32 %v246_v16 }
  0xd2   : > { %557 = vpow2.f32 %v248_v17 }
  0xd4   : > { %v312_v30 = vpop.permute.xlu0 %311 }
  0xd5   : > { %vm316_vm0 = vcmp.eq.s32.totalorder %v306_v28, %v312_v30  ;;  %vm317_vm1 = vcmp.eq.s32.totalorder %v307_v29, %v312_v30 }
  0xd7   : > { %v552_v18 = vpop.eup %551 }
  0xd8   : > { %v554_v19 = vpop.eup %553 }
  0xd9   : > { %v250_v20 = vadd.f32 %v554_v19, %v552_v18 }
  0xdb   : > { %v556_v21 = vpop.eup %555  ;;  %251 = vadd.xlane.f32.xlu1 %v250_v20 }
  0xdc   : > { %v558_v22 = vpop.eup %557 }
  0xdd   : > { %v253_v23 = vadd.f32 %v558_v22, %v556_v21 }
  0xdf   : > { %254 = vadd.xlane.f32.xlu1 %v253_v23 }
  0xf0   : > { %314 = vperm.xlu1 %550, %v309_v24  }
 0x168   : > { %v252_v25 = vpop.xlane.xlu1 %251 }
 0x169   : > { %559 = vlog2.f32 %v252_v25 }
 0x16c   : > { %v255_v27 = vpop.xlane.xlu1 %254 }
 0x16d   : > { %561 = vlog2.f32 %v255_v27 }
 0x170   : > { %v315_v33 = vpop.permute.xlu1 %314 }
 0x171   : > { %vm318_vm2 = vcmp.eq.s32.totalorder %v306_v28, %v315_v33  ;;  %vm319_vm3 = vcmp.eq.s32.totalorder %v307_v29, %v315_v33 }
 0x173   : > { %v560_v31 = vpop.eup %559 }
 0x174   : > { %v257_v32 = vmul.f32 0.6931472, %v560_v31 }
 0x176   : > { %v260_v34 = vsub.f32 %v238_v9, %v257_v32  ;;  %v261_v35 = vsub.f32 %v239_v10, %v257_v32 }
 0x177   : > { %v562_v36 = vpop.eup %561 }
 0x178   : > { %v259_v37 = vmul.f32 0.6931472, %v562_v36  ;;  %264 = vst [vmem:[%s206_s17] sm:$0xff] %v260_v34  ;;  %265 = vst [vmem:[%s206_s17 + $0x8] sm:$0xff] %v261_v35  ;;  %v320_v38 = vsel %vm316_vm0, %v260_v34, 0.0  ;;  %v321_v39 = vsel %vm317_vm1, %v261_v35, 0.0 }
 0x179   : > { %v324_v40 = vadd.f32 %v321_v39, %v320_v38 }
 0x17a   : > { %v262_v41 = vsub.f32 %v240_v14, %v259_v37  ;;  %v263_v42 = vsub.f32 %v241_v15, %v259_v37 }
 0x17b   : > { %325 = vadd.xlane.f32.xlu1 %v324_v40 }
 0x17c   : > { %266 = vst [vmem:[%s206_s17 + $0x10] sm:$0xff] %v262_v41  ;;  %267 = vst [vmem:[%s206_s17 + $0x18] sm:$0xff] %v263_v42  ;;  %v322_v43 = vsel %vm318_vm2, %v262_v41, 0.0  ;;  %v323_v44 = vsel %vm319_vm3, %v263_v42, 0.0 }
 0x17d   : > { %v327_v45 = vadd.f32 %v323_v44, %v322_v43 }
 0x17f   : > { %328 = vadd.xlane.f32.xlu0 %v327_v45 }
 0x180   : > { %606 = shalt.err (!%p603_p3)
}
 0x181   : > { %s607_s11 = scalar_lea.hbm %s819_s27, 512  ;;  %s611_s8 = scalar_lea.hbm %s871_s2, 4096 }
 0x182   : > { %p608_p4 = scmp.ne.s32.totalorder %s819_s27, %s607_s11  ;;  %p612_p2 = scmp.lt.u32.totalorder %s819_s27, %s871_s2 }
 0x183   : > { %p613_p7 = scmp.lt.u32.totalorder %s611_s8, %s607_s11  ;;  %p615_p6 = scmp.lt.u32.totalorder %s607_s11, %s819_s27 }
 0x184   : > { %p609_p5 = pnand %p608_p4, %p879_p11 }
 0x185   : > { %p614_p10 = por %p613_p7, %p612_p2 }
 0x186   : > { %p610_p0 = pneg %p609_p5 }
 0x187   : > { %p616_p12 = por %p615_p6, %p614_p10 }
 0x189   : > { %p617_p8 = pnand %p616_p12, %p610_p0 }
 0x18b   : > { %620 = shalt.err (!%p617_p8)
}
 0x18c   : > { %s666_s22 = smov 256   ;;  %s667_s26 = smov 16   ;;  %v270_v46 = vshrl.u32 %v269_v26, 7  ;;  %vm334_vm15 = vcmask 7168  }
 0x18d   : > { %500 = dma.vmem_to_hbm [thread:$0]  (%p879_p11), %s813_s19, 512, %s819_s27, %s338_s28, %s666_s22, %s666_s22, %s667_s26  }
 0x18e   : > { %s485_s29 = sshll.u32 %s709_s16, 4  ;;  %v271_v48 = vadd.s32 8, %v270_v46  ;;  %s226_s5 = scalar_lea.vmem %s872_s3, %s482_s23 }
 0x18f   : > { %v272_v47 = vstv %s485_s29 }
 0x190   : > { %v273_v49 = vadd.s32 %v272_v47, %v270_v46  ;;  %v274_v51 = vadd.s32 %v272_v47, %v271_v48 }
 0x192   : > { %v276_v50 = vsub.s32 0, %v273_v49  ;;  %v283_v53 = vsub.s32 0, %v274_v51  ;;  %vm275_vm4 = vcmp.lt.s32.totalorder %v273_v49, 0  ;;  %vm282_vm5 = vcmp.lt.s32.totalorder %v274_v51, 0 }
 0x193   : > { %vm301_vm13 = vcmp.lt.s32.totalorder %v273_v49, 128  ;;  %vm302_vm1 = vcmp.lt.s32.totalorder %v274_v51, 128 }
 0x194   : > { %v486_v52 = vmin.u32 %v276_v50, %v273_v49  ;;  %v487_v55 = vmin.u32 %v283_v53, %v274_v51 }
 0x196   : > { %v279_v54 = vand.u32 7, %v486_v52  ;;  %v286_v57 = vand.u32 7, %v487_v55 }
 0x198   : > { %v280_v56 = vsub.s32 0, %v279_v54  ;;  %v287_v59 = vsub.s32 0, %v286_v57 }
 0x19a   : > { %v281_v58 = vsel %vm275_vm4, %v280_v56, %v279_v54  ;;  %v288_v60 = vsel %vm282_vm5, %v287_v59, %v286_v57 }
 0x19b   : > { %vm289_vm6 = vcmp.ne.s32.totalorder %v281_v58, 0  ;;  %vm291_vm7 = vcmp.lt.s32.totalorder %v281_v58, 0  ;;  %v295_v61 = vadd.s32 8, %v281_v58  ;;  %vm290_vm9 = vcmp.ne.s32.totalorder %v288_v60, 0 }
 0x19c   : > { %vm293_vm8 = vmand %vm291_vm7, %vm289_vm6  ;;  %vm292_vm10 = vcmp.lt.s32.totalorder %v288_v60, 0  ;;  %v296_v63 = vadd.s32 8, %v288_v60 }
 0x19d   : > { %v297_v62 = vsel %vm293_vm8, %v295_v61, %v281_v58  ;;  %vm294_vm11 = vmand %vm292_vm10, %vm290_vm9 }
 0x19e   : > { %vm299_vm12 = vcmp.eq.s32.totalorder %v297_v62, 0  ;;  %v298_v0 = vsel %vm294_vm11, %v296_v63, %v288_v60 }
 0x19f   : > { %vm303_vm14 = vmand %vm299_vm12, %vm301_vm13  ;;  %vm300_vm0 = vcmp.eq.s32.totalorder %v298_v0, 0 }
 0x1a0   : > { %vm304_vm2 = vmand %vm300_vm0, %vm302_vm1 }
 0x208   : > { %v326_v1 = vpop.xlane.xlu1 %325 }
 0x209   : > { %v330_v2 = vsub.f32 0.0, %v326_v1 }
 0x20b   : > { %v332_v3 = vsel %vm303_vm14, %v330_v2, 0.0 }
 0x20c   : > { %335 = vst.msk [vmem:[%s226_s5] sm:$0xff] %vm334_vm15, %v332_v3  ;;  %v329_v4 = vpop.xlane.xlu0 %328 }
 0x20d   : > { %v331_v5 = vsub.f32 0.0, %v329_v4 }
 0x20f   : > { %v333_v6 = vsel %vm304_vm2, %v331_v5, 0.0 }
 0x210   : > { %336 = vst.msk [vmem:[%s226_s5 + $0x8] sm:$0xff] %vm334_vm15, %v333_v6 }
 0x211 PF: > { %p511_p11 = scmp.ge.s32.totalorder %s659_s15, 2  ;;  %s376_s4 = sand.u32 1, %s647_s12  }
 0x212   : > { %p880_p9 = scmp.ne.s32.totalorder %s877_s25, 0  ;;  %s377_s23 = scalar_lea.sflag [#allocation4], %s376_s4 }
 0x214   : > { %p507_p13 = pnand %p511_p11, %p880_p9 }
 0x216   : > { %642 = dma.done.wait (!%p507_p13), %s377_s23, 512  }
 0x217   : > { %644 = vsyncadd (!%p507_p13), %s377_s23, 4294966784  ;;  %p17_p1 = scmp.ge.s32.totalorder %s713_s18, 10   ;;  %s881_s12 = smov %s651_s13 }
 0x218   : > { %s882_s13 = smov %s655_s14  ;;  %s883_s14 = smov %s725_s21 }
 0x219   : > { %s884_s15 = smov %s713_s18  ;;  %19 = sbr.rel (!%p17_p1) target bundleno = 5 (0x5), region = 88 }
 0x220   :  { %390 = vsyncpa [#allocation3], 1 }
 0x221   :  { %392 = vsyncpa [#allocation3 + $0x1], 1 }
 0x222   :  { %393 = vsyncpa [#allocation4], 1 }
 0x223   :  { %395 = vsyncpa [#allocation4 + $0x1], 1 }

</bundles_post_ra>
